<compile_context>
chip_gen: v7x
topology: tpu7x:2x2x1
jax: 0.10.0
libtpu: 0.0.40
codegen_flags: <defaults>
</compile_context>

<pallas_src>
import functools

import jax
import jax.numpy as jnp
from jax import lax
from jax.experimental import pallas as pl
from jax.experimental.pallas import tpu as pltpu


def _spatial_attention_kernel(w_ref, b_ref, x_ref, o_ref, s_ref, m_ref, *,
                              W, HW, pack):
    # w_ref: SMEM (18,)  flattened conv weight, index = in_ch*9 + ky*3 + kx.
    #        The 9 "avg" taps (in_ch==0) are pre-scaled by 1/C on the host.
    # b_ref: SMEM (1,)   conv bias
    # x_ref: VMEM (TB, CKg, HWp)  lane-dense flattened input block (k-th chunk)
    # o_ref: VMEM (TB, 1, HWp)    lane-dense output block (written on last k)
    # s_ref/m_ref: VMEM (TB, HWp) f32 running channel sum / max scratch
    k = pl.program_id(1)
    nk = pl.num_programs(1)
    TB, CKg, HWp = x_ref.shape

    # ---- partial channel reduction for this chunk (sum + max) --------------
    # Sub-chunks are sublane-packing sized so the slices stay tile aligned;
    # the wrapper caps CKg at 8*pack so this static loop stays small.
    s_part = None
    m_part = None
    for c0 in range(0, CKg, pack):
        ck = min(pack, CKg - c0)
        xc = x_ref[:, c0:c0 + ck, :]                        # native dtype
        cs = jnp.sum(xc.astype(jnp.float32), axis=1)        # widen for sum only
        cm = jnp.max(xc, axis=1).astype(jnp.float32)        # max exact in dtype
        if s_part is None:
            s_part, m_part = cs, cm
        else:
            s_part = s_part + cs
            m_part = jnp.maximum(m_part, cm)

    @pl.when(k == 0)
    def _():
        s_ref[...] = s_part
        m_ref[...] = m_part

    @pl.when(k > 0)
    def _():
        s_ref[...] = s_ref[...] + s_part
        m_ref[...] = jnp.maximum(m_ref[...], m_part)

    # ---- finalize: 3x3 conv + sigmoid on the last channel step --------------
    @pl.when(k == nk - 1)
    def _():
        s = s_ref[...]
        m = m_ref[...]

        # Boundary masks for the implicit zero padding (padding=1), built at
        # (1, HWp) and broadcast across the batch tile.
        lane = lax.broadcasted_iota(jnp.int32, (1, HWp), 1)   # flat p = h*W + w
        col = lane % W
        left_ok = col > 0            # reading column w-1 is valid
        right_ok = col < (W - 1)     # reading column w+1 is valid
        top_ok = lane >= W           # reading row h-1 is valid
        bot_ok = lane < (HW - W)     # reading row h+1 is valid

        acc = jnp.zeros((TB, HWp), jnp.float32) + b_ref[0]
        for ip, plane in enumerate((s, m)):          # in_ch 0: avg(sum), 1: max
            # Column (dx) shifts hoisted out of the ky loop (2 XLU rolls/plane).
            c_m1 = jnp.where(left_ok, pltpu.roll(plane, shift=1, axis=1), 0.0)
            c_p1 = jnp.where(right_ok, pltpu.roll(plane, shift=HWp - 1, axis=1), 0.0)
            for ky in range(3):
                w0 = w_ref[ip * 9 + ky * 3 + 0]
                w1 = w_ref[ip * 9 + ky * 3 + 1]
                w2 = w_ref[ip * 9 + ky * 3 + 2]
                t = w0 * c_m1 + w1 * plane + w2 * c_p1     # weighted kernel row
                if ky == 0:      # reads row h-1 -> roll +W, mask top edge
                    acc = acc + jnp.where(top_ok, pltpu.roll(t, shift=W, axis=1), 0.0)
                elif ky == 1:    # reads row h   -> no shift
                    acc = acc + t
                else:            # reads row h+1 -> roll -W, mask bottom edge
                    acc = acc + jnp.where(bot_ok, pltpu.roll(t, shift=HWp - W, axis=1), 0.0)

        o_ref[:, 0, :] = jax.nn.sigmoid(acc).astype(o_ref.dtype)


def _largest_divisor_leq(n, target):
    d = max(1, min(n, target))
    while n % d:
        d -= 1
    return d


def _pick_channel_chunk(C, target, pack):
    """Largest divisor of C that is <= target and either sublane-aligned
    (multiple of `pack`) or the full C; falls back to C (block dim == full
    array dim is always a legal block shape)."""
    best = None
    for d in range(1, C + 1):
        if C % d == 0 and d <= target and (d % pack == 0 or d == C):
            best = d
    return C if best is None else best


def _vmem_capacity_bytes():
    try:
        return int(pltpu.get_tpu_info().vmem_capacity_bytes)
    except Exception:
        return 128 * 1024 * 1024


@jax.jit
def spatial_attention(x, conv_w, conv_b):
    """x: (B, C, H, W); conv_w: (1, 2, 3, 3); conv_b: (1,). Returns (B,1,H,W)."""
    B, C, H, W = x.shape
    HW = H * W
    HWp = ((HW + 127) // 128) * 128       # lane-dense slab width (128 multiple)

    itemsize = jnp.dtype(x.dtype).itemsize
    pack = 8 * max(1, 4 // itemsize)      # sublane packing: 8 f32, 16 bf16, 32 i8

    # Free layout change: flatten spatial dims so the last (lane) axis is
    # dense; pad the lane axis only when H*W is not a 128 multiple (the conv
    # masks never let pad lanes leak into valid outputs).
    x2 = x.reshape(B, C, HW)
    if HWp != HW:
        x2 = jnp.pad(x2, ((0, 0), (0, 0), (0, HWp - HW)))

    # Fold the 1/C of the channel mean into the 9 "avg" taps (exact prescale).
    w = conv_w.astype(jnp.float32).reshape(2, 9)
    w = w * jnp.array([[1.0 / C], [1.0]], jnp.float32)
    w_flat = w.reshape(-1)                                  # (18,)
    b_flat = conv_b.reshape(-1).astype(jnp.float32)         # (1,)

    # ---- per-generation tile / VMEM sizing ----------------------------------
    vmem_cap = _vmem_capacity_bytes()
    # 64 MiB parts (v7x): stay under ~48 MiB pipelined; 128 MiB parts: ~64 MiB.
    vmem_budget = 48 * 1024 * 1024 if vmem_cap <= 64 * 1024 * 1024 else 64 * 1024 * 1024
    vmem_budget = min(vmem_budget, vmem_cap)

    # Batch tile: keep per-tile scratch/output modest and, when B allows, keep
    # >= 2 batch ("parallel") grid steps (megacore on v7x + pipeline overlap).
    per_row = HWp * (2 * 4 + 2 * itemsize)        # 2 f32 scratch + 2x out buffer
    tb_target = max(1, min(B, (8 * 1024 * 1024) // max(per_row, 1)))
    if B >= 2:
        tb_target = min(tb_target, max(1, B // 2))
    TB = _largest_divisor_leq(B, tb_target)

    # Channel chunk (second grid axis): keep the double-buffered input block
    # inside the VMEM budget and cap at 8 sublane-packs per step (bounded
    # in-kernel unroll, decent DMA block size).
    fixed = 2 * TB * HWp * itemsize + 2 * TB * HWp * 4 + (2 << 20)
    per_chan = TB * HWp * itemsize
    in_budget = max(per_chan, (vmem_budget - fixed) // 2)
    ckg_target = min(C, max(1, in_budget // per_chan), 8 * pack)
    CKg = _pick_channel_chunk(C, ckg_target, pack)

    n_b = B // TB
    n_c = C // CKg                                # CKg always divides C

    in_block = TB * CKg * HWp * itemsize
    out_block = TB * HWp * itemsize
    scratch_bytes = 2 * TB * HWp * 4
    vmem_bytes = int(min(vmem_cap,
                         max(4 << 20,
                             2 * in_block + 2 * out_block + scratch_bytes + (2 << 20))))

    if n_b * n_c == 1:
        # Single-step grid: a second input buffer would be pure VMEM waste.
        x_spec = pl.BlockSpec((TB, CKg, HWp), lambda i, k: (i, k, 0),
                              pipeline_mode=pl.Buffered(1))
    else:
        x_spec = pl.BlockSpec((TB, CKg, HWp), lambda i, k: (i, k, 0))

    kernel = functools.partial(_spatial_attention_kernel, W=W, HW=HW, pack=pack)
    out = pl.pallas_call(
        kernel,
        out_shape=jax.ShapeDtypeStruct((B, 1, HWp), x.dtype),
        grid=(n_b, n_c),
        in_specs=[
            pl.BlockSpec(memory_space=pltpu.MemorySpace.SMEM),   # conv weights (18,)
            pl.BlockSpec(memory_space=pltpu.MemorySpace.SMEM),   # conv bias (1,)
            x_spec,
        ],
        out_specs=pl.BlockSpec((TB, 1, HWp), lambda i, k: (i, 0, 0)),
        scratch_shapes=[
            pltpu.VMEM((TB, HWp), jnp.float32),   # running channel sum
            pltpu.VMEM((TB, HWp), jnp.float32),   # running channel max
        ],
        compiler_params=pltpu.CompilerParams(
            dimension_semantics=("parallel", "arbitrary"),
            vmem_limit_bytes=vmem_bytes,
        ),
    )(w_flat, b_flat, x2)

    if HWp != HW:
        out = out[:, :, :HW]
    return out.reshape(B, 1, H, W)


def _reference(x, conv_w, conv_b):
    # Pure-JAX reference (matches the PyTorch forward exactly).
    avg = jnp.mean(x, axis=1, keepdims=True)
    mx = jnp.max(x, axis=1, keepdims=True)
    cat = jnp.concatenate([avg, mx], axis=1)                # (B, 2, H, W)
    y = lax.conv_general_dilated(
        cat, conv_w, window_strides=(1, 1), padding=((1, 1), (1, 1)),
        dimension_numbers=("NCHW", "OIHW", "NCHW"))
    return jax.nn.sigmoid(y + conv_b.reshape(1, -1, 1, 1))


if __name__ == "__main__":
    key = jax.random.PRNGKey(0)
    kx, kw, kb = jax.random.split(key, 3)

    B, C, H, W = 2, 4, 16, 16
    x = jax.random.normal(kx, (B, C, H, W), dtype=jnp.float32)

    # Deterministic synthetic parameters (Conv2d(2, 1, kernel_size=3)):
    fan_in = 2 * 3 * 3
    bound = 1.0 / (fan_in ** 0.5)
    conv_w = jax.random.uniform(kw, (1, 2, 3, 3), jnp.float32, -bound, bound)
    conv_b = jax.random.uniform(kb, (1,), jnp.float32, -bound, bound)

    out = spatial_attention(x, conv_w, conv_b)
    out = jax.block_until_ready(out)

    ref = _reference(x, conv_w, conv_b)
    assert out.shape == (B, 1, H, W)
    assert jnp.allclose(out, ref, rtol=1e-5, atol=1e-5)

    print("KERNEL_OK")
</pallas_src>

<mosaic_0001>
module attributes {stable_mosaic.version = 11 : i64} {
  func.func @_spatial_attention_kernel(%arg0: i32, %arg1: i32, %arg2: memref<18xf32, #tpu.memory_space<smem>>, %arg3: memref<1xf32, #tpu.memory_space<smem>>, %arg4: memref<1x4x256xf32, #tpu.memory_space<vmem>>, %arg5: memref<1x1x256xf32, #tpu.memory_space<vmem>>, %arg6: memref<1x256xf32, #tpu.memory_space<vmem>>, %arg7: memref<1x256xf32, #tpu.memory_space<vmem>>) attributes {dimension_semantics = [#tpu.dimension_semantics<parallel>, #tpu.dimension_semantics<arbitrary>], iteration_bounds = array<i64: 2, 1>, scalar_prefetch = 0 : i64, scratch_operands = 2 : i64, tpu.core_type = #tpu.core_type<tc>, window_params = [{transform_indices = @transform_0, window_bounds = array<i64: 18>}, {transform_indices = @transform_1, window_bounds = array<i64: 1>}, {transform_indices = @transform_2, window_bounds = array<i64: 1, 4, 256>}, {transform_indices = @transform_3, window_bounds = array<i64: 1, 1, 256>}]} {
    %c0 = arith.constant 0 : index
    %c0_0 = arith.constant 0 : index
    %c0_1 = arith.constant 0 : index
    %0 = vector.load %arg4[%c0, %c0_0, %c0_1] : memref<1x4x256xf32, #tpu.memory_space<vmem>>, vector<1x4x256xf32>
    %cst = arith.constant dense<0.000000e+00> : vector<1x256xf32>
    %1 = vector.multi_reduction <add>, %0, %cst [1] : vector<1x4x256xf32> to vector<1x256xf32>
    %cst_2 = arith.constant dense<0xFF800000> : vector<1x256xf32>
    %2 = vector.multi_reduction <maximumf>, %0, %cst_2 [1] : vector<1x4x256xf32> to vector<1x256xf32>
    %c0_i32 = arith.constant 0 : i32
    %3 = arith.cmpi eq, %arg1, %c0_i32 : i32
    %4 = arith.extui %3 : i1 to i32
    %c0_i32_3 = arith.constant 0 : i32
    %5 = arith.cmpi ne, %4, %c0_i32_3 : i32
    scf.if %5 {
      %c0_8 = arith.constant 0 : index
      %c0_9 = arith.constant 0 : index
      %12 = vector.load %arg6[%c0_8, %c0_9] : memref<1x256xf32, #tpu.memory_space<vmem>>, vector<1x256xf32>
      tpu.vector_store %arg6[%c0_8, %c0_9], %1 {strides = array<i32>} : memref<1x256xf32, #tpu.memory_space<vmem>>, vector<1x256xf32>,
      %c0_10 = arith.constant 0 : index
      %c0_11 = arith.constant 0 : index
      %13 = vector.load %arg7[%c0_10, %c0_11] : memref<1x256xf32, #tpu.memory_space<vmem>>, vector<1x256xf32>
      tpu.vector_store %arg7[%c0_10, %c0_11], %2 {strides = array<i32>} : memref<1x256xf32, #tpu.memory_space<vmem>>, vector<1x256xf32>,
    } else {
    }
    %c0_i32_4 = arith.constant 0 : i32
    %6 = arith.cmpi sgt, %arg1, %c0_i32_4 : i32
    %7 = arith.extui %6 : i1 to i32
    %c0_i32_5 = arith.constant 0 : i32
    %8 = arith.cmpi ne, %7, %c0_i32_5 : i32
    scf.if %8 {
      %c0_8 = arith.constant 0 : index
      %c0_9 = arith.constant 0 : index
      %12 = vector.load %arg6[%c0_8, %c0_9] : memref<1x256xf32, #tpu.memory_space<vmem>>, vector<1x256xf32>
      %13 = arith.addf %12, %1 : vector<1x256xf32>
      %c0_10 = arith.constant 0 : index
      %c0_11 = arith.constant 0 : index
      %14 = vector.load %arg6[%c0_10, %c0_11] : memref<1x256xf32, #tpu.memory_space<vmem>>, vector<1x256xf32>
      tpu.vector_store %arg6[%c0_10, %c0_11], %13 {strides = array<i32>} : memref<1x256xf32, #tpu.memory_space<vmem>>, vector<1x256xf32>,
      %c0_12 = arith.constant 0 : index
      %c0_13 = arith.constant 0 : index
      %15 = vector.load %arg7[%c0_12, %c0_13] : memref<1x256xf32, #tpu.memory_space<vmem>>, vector<1x256xf32>
      %16 = arith.maximumf %15, %2 : vector<1x256xf32>
      %c0_14 = arith.constant 0 : index
      %c0_15 = arith.constant 0 : index
      %17 = vector.load %arg7[%c0_14, %c0_15] : memref<1x256xf32, #tpu.memory_space<vmem>>, vector<1x256xf32>
      tpu.vector_store %arg7[%c0_14, %c0_15], %16 {strides = array<i32>} : memref<1x256xf32, #tpu.memory_space<vmem>>, vector<1x256xf32>,
    } else {
    }
    %c0_i32_6 = arith.constant 0 : i32
    %9 = arith.cmpi eq, %arg1, %c0_i32_6 : i32
    %10 = arith.extui %9 : i1 to i32
    %c0_i32_7 = arith.constant 0 : i32
    %11 = arith.cmpi ne, %10, %c0_i32_7 : i32
    scf.if %11 {
      %c0_8 = arith.constant 0 : index
      %c0_9 = arith.constant 0 : index
      %12 = vector.load %arg6[%c0_8, %c0_9] : memref<1x256xf32, #tpu.memory_space<vmem>>, vector<1x256xf32>
      %c0_10 = arith.constant 0 : index
      %c0_11 = arith.constant 0 : index
      %13 = vector.load %arg7[%c0_10, %c0_11] : memref<1x256xf32, #tpu.memory_space<vmem>>, vector<1x256xf32>
      %14 = tpu.iota {dimensions = array<i32: 1>} : vector<1x256xi32>
      %c16_i32 = arith.constant 16 : i32
      %c0_i32_12 = arith.constant 0 : i32
      %15 = arith.cmpi eq, %c16_i32, %c0_i32_12 : i32
      %c1_i32 = arith.constant 1 : i32
      %16 = arith.select %15, %c1_i32, %c16_i32 : i32
      %17 = vector.broadcast %16 : i32 to vector<1x256xi32>
      %18 = arith.remsi %14, %17 : vector<1x256xi32>
      %c0_i32_13 = arith.constant 0 : i32
      %19 = vector.broadcast %c0_i32_13 : i32 to vector<1x256xi32>
      %20 = arith.cmpi ne, %18, %19 : vector<1x256xi32>
      %c0_i32_14 = arith.constant 0 : i32
      %21 = vector.broadcast %c0_i32_14 : i32 to vector<1x256xi32>
      %22 = arith.cmpi slt, %18, %21 : vector<1x256xi32>
      %c0_i32_15 = arith.constant 0 : i32
      %23 = arith.cmpi slt, %16, %c0_i32_15 : i32
      %24 = vector.broadcast %23 : i1 to vector<1x256xi1>
      %25 = vector.broadcast %24 : vector<1x256xi1> to vector<1x256xi1>
      %26 = arith.xori %22, %25 : vector<1x256xi1>
      %27 = arith.andi %26, %20 : vector<1x256xi1>
      %28 = vector.broadcast %16 : i32 to vector<1x256xi32>
      %29 = arith.addi %18, %28 : vector<1x256xi32>
      %30 = arith.select %27, %29, %18 : vector<1x256xi1>, vector<1x256xi32>
      %c0_i32_16 = arith.constant 0 : i32
      %31 = vector.broadcast %c0_i32_16 : i32 to vector<1x256xi32>
      %32 = arith.cmpi sgt, %30, %31 : vector<1x256xi32>
      %c15_i32 = arith.constant 15 : i32
      %33 = vector.broadcast %c15_i32 : i32 to vector<1x256xi32>
      %34 = arith.cmpi slt, %30, %33 : vector<1x256xi32>
      %c16_i32_17 = arith.constant 16 : i32
      %35 = vector.broadcast %c16_i32_17 : i32 to vector<1x256xi32>
      %36 = arith.cmpi sge, %14, %35 : vector<1x256xi32>
      %c240_i32 = arith.constant 240 : i32
      %37 = vector.broadcast %c240_i32 : i32 to vector<1x256xi32>
      %38 = arith.cmpi slt, %14, %37 : vector<1x256xi32>
      %cst_18 = arith.constant 0.000000e+00 : f32
      %39 = vector.broadcast %cst_18 : f32 to vector<1x256xf32>
      %c0_19 = arith.constant 0 : index
      %40 = memref.load %arg3[%c0_19] : memref<1xf32, #tpu.memory_space<smem>>
      %41 = vector.broadcast %40 : f32 to vector<1x256xf32>
      %42 = arith.addf %39, %41 : vector<1x256xf32>
      %c1_i32_20 = arith.constant 1 : i32
      %43 = tpu.dynamic_rotate %12 by %c1_i32_20 dim 1 : vector<1x256xf32>, i32 -> vector<1x256xf32>
      %cst_21 = arith.constant 0.000000e+00 : f32
      %44 = vector.broadcast %cst_21 : f32 to vector<1x256xf32>
      %45 = arith.select %32, %43, %44 : vector<1x256xi1>, vector<1x256xf32>
      %c255_i32 = arith.constant 255 : i32
      %46 = tpu.dynamic_rotate %12 by %c255_i32 dim 1 : vector<1x256xf32>, i32 -> vector<1x256xf32>
      %cst_22 = arith.constant 0.000000e+00 : f32
      %47 = vector.broadcast %cst_22 : f32 to vector<1x256xf32>
      %48 = arith.select %34, %46, %47 : vector<1x256xi1>, vector<1x256xf32>
      %c0_23 = arith.constant 0 : index
      %49 = memref.load %arg2[%c0_23] : memref<18xf32, #tpu.memory_space<smem>>
      %c1 = arith.constant 1 : index
      %50 = memref.load %arg2[%c1] : memref<18xf32, #tpu.memory_space<smem>>
      %c2 = arith.constant 2 : index
      %51 = memref.load %arg2[%c2] : memref<18xf32, #tpu.memory_space<smem>>
      %52 = vector.broadcast %49 : f32 to vector<1x256xf32>
      %53 = arith.mulf %52, %45 : vector<1x256xf32>
      %54 = vector.broadcast %50 : f32 to vector<1x256xf32>
      %55 = arith.mulf %54, %12 : vector<1x256xf32>
      %56 = arith.addf %53, %55 : vector<1x256xf32>
      %57 = vector.broadcast %51 : f32 to vector<1x256xf32>
      %58 = arith.mulf %57, %48 : vector<1x256xf32>
      %59 = arith.addf %56, %58 : vector<1x256xf32>
      %c16_i32_24 = arith.constant 16 : i32
      %60 = tpu.dynamic_rotate %59 by %c16_i32_24 dim 1 : vector<1x256xf32>, i32 -> vector<1x256xf32>
      %cst_25 = arith.constant 0.000000e+00 : f32
      %61 = vector.broadcast %cst_25 : f32 to vector<1x256xf32>
      %62 = arith.select %36, %60, %61 : vector<1x256xi1>, vector<1x256xf32>
      %63 = arith.addf %42, %62 : vector<1x256xf32>
      %c3 = arith.constant 3 : index
      %64 = memref.load %arg2[%c3] : memref<18xf32, #tpu.memory_space<smem>>
      %c4 = arith.constant 4 : index
      %65 = memref.load %arg2[%c4] : memref<18xf32, #tpu.memory_space<smem>>
      %c5 = arith.constant 5 : index
      %66 = memref.load %arg2[%c5] : memref<18xf32, #tpu.memory_space<smem>>
      %67 = vector.broadcast %64 : f32 to vector<1x256xf32>
      %68 = arith.mulf %67, %45 : vector<1x256xf32>
      %69 = vector.broadcast %65 : f32 to vector<1x256xf32>
      %70 = arith.mulf %69, %12 : vector<1x256xf32>
      %71 = arith.addf %68, %70 : vector<1x256xf32>
      %72 = vector.broadcast %66 : f32 to vector<1x256xf32>
      %73 = arith.mulf %72, %48 : vector<1x256xf32>
      %74 = arith.addf %71, %73 : vector<1x256xf32>
      %75 = arith.addf %63, %74 : vector<1x256xf32>
      %c6 = arith.constant 6 : index
      %76 = memref.load %arg2[%c6] : memref<18xf32, #tpu.memory_space<smem>>
      %c7 = arith.constant 7 : index
      %77 = memref.load %arg2[%c7] : memref<18xf32, #tpu.memory_space<smem>>
      %c8 = arith.constant 8 : index
      %78 = memref.load %arg2[%c8] : memref<18xf32, #tpu.memory_space<smem>>
      %79 = vector.broadcast %76 : f32 to vector<1x256xf32>
      %80 = arith.mulf %79, %45 : vector<1x256xf32>
      %81 = vector.broadcast %77 : f32 to vector<1x256xf32>
      %82 = arith.mulf %81, %12 : vector<1x256xf32>
      %83 = arith.addf %80, %82 : vector<1x256xf32>
      %84 = vector.broadcast %78 : f32 to vector<1x256xf32>
      %85 = arith.mulf %84, %48 : vector<1x256xf32>
      %86 = arith.addf %83, %85 : vector<1x256xf32>
      %c240_i32_26 = arith.constant 240 : i32
      %87 = tpu.dynamic_rotate %86 by %c240_i32_26 dim 1 : vector<1x256xf32>, i32 -> vector<1x256xf32>
      %cst_27 = arith.constant 0.000000e+00 : f32
      %88 = vector.broadcast %cst_27 : f32 to vector<1x256xf32>
      %89 = arith.select %38, %87, %88 : vector<1x256xi1>, vector<1x256xf32>
      %90 = arith.addf %75, %89 : vector<1x256xf32>
      %c1_i32_28 = arith.constant 1 : i32
      %91 = tpu.dynamic_rotate %13 by %c1_i32_28 dim 1 : vector<1x256xf32>, i32 -> vector<1x256xf32>
      %cst_29 = arith.constant 0.000000e+00 : f32
      %92 = vector.broadcast %cst_29 : f32 to vector<1x256xf32>
      %93 = arith.select %32, %91, %92 : vector<1x256xi1>, vector<1x256xf32>
      %c255_i32_30 = arith.constant 255 : i32
      %94 = tpu.dynamic_rotate %13 by %c255_i32_30 dim 1 : vector<1x256xf32>, i32 -> vector<1x256xf32>
      %cst_31 = arith.constant 0.000000e+00 : f32
      %95 = vector.broadcast %cst_31 : f32 to vector<1x256xf32>
      %96 = arith.select %34, %94, %95 : vector<1x256xi1>, vector<1x256xf32>
      %c9 = arith.constant 9 : index
      %97 = memref.load %arg2[%c9] : memref<18xf32, #tpu.memory_space<smem>>
      %c10 = arith.constant 10 : index
      %98 = memref.load %arg2[%c10] : memref<18xf32, #tpu.memory_space<smem>>
      %c11 = arith.constant 11 : index
      %99 = memref.load %arg2[%c11] : memref<18xf32, #tpu.memory_space<smem>>
      %100 = vector.broadcast %97 : f32 to vector<1x256xf32>
      %101 = arith.mulf %100, %93 : vector<1x256xf32>
      %102 = vector.broadcast %98 : f32 to vector<1x256xf32>
      %103 = arith.mulf %102, %13 : vector<1x256xf32>
      %104 = arith.addf %101, %103 : vector<1x256xf32>
      %105 = vector.broadcast %99 : f32 to vector<1x256xf32>
      %106 = arith.mulf %105, %96 : vector<1x256xf32>
      %107 = arith.addf %104, %106 : vector<1x256xf32>
      %c16_i32_32 = arith.constant 16 : i32
      %108 = tpu.dynamic_rotate %107 by %c16_i32_32 dim 1 : vector<1x256xf32>, i32 -> vector<1x256xf32>
      %cst_33 = arith.constant 0.000000e+00 : f32
      %109 = vector.broadcast %cst_33 : f32 to vector<1x256xf32>
      %110 = arith.select %36, %108, %109 : vector<1x256xi1>, vector<1x256xf32>
      %111 = arith.addf %90, %110 : vector<1x256xf32>
      %c12 = arith.constant 12 : index
      %112 = memref.load %arg2[%c12] : memref<18xf32, #tpu.memory_space<smem>>
      %c13 = arith.constant 13 : index
      %113 = memref.load %arg2[%c13] : memref<18xf32, #tpu.memory_space<smem>>
      %c14 = arith.constant 14 : index
      %114 = memref.load %arg2[%c14] : memref<18xf32, #tpu.memory_space<smem>>
      %115 = vector.broadcast %112 : f32 to vector<1x256xf32>
      %116 = arith.mulf %115, %93 : vector<1x256xf32>
      %117 = vector.broadcast %113 : f32 to vector<1x256xf32>
      %118 = arith.mulf %117, %13 : vector<1x256xf32>
      %119 = arith.addf %116, %118 : vector<1x256xf32>
      %120 = vector.broadcast %114 : f32 to vector<1x256xf32>
      %121 = arith.mulf %120, %96 : vector<1x256xf32>
      %122 = arith.addf %119, %121 : vector<1x256xf32>
      %123 = arith.addf %111, %122 : vector<1x256xf32>
      %c15 = arith.constant 15 : index
      %124 = memref.load %arg2[%c15] : memref<18xf32, #tpu.memory_space<smem>>
      %c16 = arith.constant 16 : index
      %125 = memref.load %arg2[%c16] : memref<18xf32, #tpu.memory_space<smem>>
      %c17 = arith.constant 17 : index
      %126 = memref.load %arg2[%c17] : memref<18xf32, #tpu.memory_space<smem>>
      %127 = vector.broadcast %124 : f32 to vector<1x256xf32>
      %128 = arith.mulf %127, %93 : vector<1x256xf32>
      %129 = vector.broadcast %125 : f32 to vector<1x256xf32>
      %130 = arith.mulf %129, %13 : vector<1x256xf32>
      %131 = arith.addf %128, %130 : vector<1x256xf32>
      %132 = vector.broadcast %126 : f32 to vector<1x256xf32>
      %133 = arith.mulf %132, %96 : vector<1x256xf32>
      %134 = arith.addf %131, %133 : vector<1x256xf32>
      %c240_i32_34 = arith.constant 240 : i32
      %135 = tpu.dynamic_rotate %134 by %c240_i32_34 dim 1 : vector<1x256xf32>, i32 -> vector<1x256xf32>
      %cst_35 = arith.constant 0.000000e+00 : f32
      %136 = vector.broadcast %cst_35 : f32 to vector<1x256xf32>
      %137 = arith.select %38, %135, %136 : vector<1x256xi1>, vector<1x256xf32>
      %138 = arith.addf %123, %137 : vector<1x256xf32>
      %139 = arith.negf %138 : vector<1x256xf32>
      %140 = math.exp %139 : vector<1x256xf32>
      %cst_36 = arith.constant 1.000000e+00 : f32
      %141 = vector.broadcast %cst_36 : f32 to vector<1x256xf32>
      %142 = arith.addf %141, %140 : vector<1x256xf32>
      %143 = arith.divf %141, %142 : vector<1x256xf32>
      %c0_37 = arith.constant 0 : index
      %c0_38 = arith.constant 0 : index
      %c0_39 = arith.constant 0 : index
      %144 = vector.load %arg5[%c0_37, %c0_38, %c0_39] : memref<1x1x256xf32, #tpu.memory_space<vmem>>, vector<1x1x256xf32>
      %145 = vector.shape_cast %144 : vector<1x1x256xf32> to vector<1x256xf32>
      %146 = vector.shape_cast %143 : vector<1x256xf32> to vector<1x1x256xf32>
      tpu.vector_store %arg5[%c0_37, %c0_38, %c0_39], %146 {strides = array<i32>} : memref<1x1x256xf32, #tpu.memory_space<vmem>>, vector<1x1x256xf32>,
    } else {
    }
    return
  }
  func.func @transform_0(%arg0: i32, %arg1: i32) -> i32 {
    %c0_i32 = arith.constant 0 : i32
    %c0_i32_0 = arith.constant 0 : i32
    return %c0_i32 : i32
  }
  func.func @transform_1(%arg0: i32, %arg1: i32) -> i32 {
    %c0_i32 = arith.constant 0 : i32
    %c0_i32_0 = arith.constant 0 : i32
    return %c0_i32 : i32
  }
  func.func @transform_2(%arg0: i32, %arg1: i32) -> (i32, i32, i32) {
    %c0_i32 = arith.constant 0 : i32
    %c0_i32_0 = arith.constant 0 : i32
    return %arg0, %arg1, %c0_i32 : i32, i32, i32
  }
  func.func @transform_3(%arg0: i32, %arg1: i32) -> (i32, i32, i32) {
    %c0_i32 = arith.constant 0 : i32
    %c0_i32_0 = arith.constant 0 : i32
    %c0_i32_1 = arith.constant 0 : i32
    return %arg0, %c0_i32, %c0_i32_0 : i32, i32, i32
  }
}

</mosaic_0001>

<bundles_post_ra>
// kernel: mul.0
= control target key start
LH: loop header
LB: loop body
LE: loop exit
PB: predicated region body
PF: predicated region fallthrough
CT: control target
= control target key end

     0   :  { %s34_s0 = inlined_call_operand.vmem [shape: f32[18], index: 0, kind: input, shape index: {}]   ;;  %s35_s1 = inlined_call_operand.vmem [shape: f32[18], index: 1, kind: input, shape index: {}]   ;;  %s36_s2 = inlined_call_operand.vmem [shape: f32[18], index: 2, kind: output, shape index: {}]  }
   0x1   :  { %v3_v0 = vld [vmem:[%s34_s0] sm:$0x1] }
   0x2   :  { %v4_v1 = vld [vmem:[%s35_s1] sm:$0x1] }
   0x3   :  { %v7_v2 = vmul.f32 %v4_v1, %v3_v0 }
   0x5   :  { %9 = vst [vmem:[%s36_s2] sm:$0x1] %v7_v2 }

// kernel: spatial_attention.1
= control target key start
LH: loop header
LB: loop body
LE: loop exit
PB: predicated region body
PF: predicated region fallthrough
CT: control target
= control target key end

     0   :  { %s1196_s0 = inlined_call_operand.vmem [shape: f32[18], index: 0, kind: input, shape index: {}]   ;;  %s1197_s1 = inlined_call_operand.<no memory space> [shape: f32[1], index: 1, kind: input, shape index: {}]   ;;  %s1198_s2 = inlined_call_operand.vmem [shape: f32[2,4,256], index: 2, kind: input, shape index: {}]   ;;  %s1199_s3 = inlined_call_operand.vmem [shape: f32[2,1,256], index: 3, kind: output, shape index: {}]  }
   0x1   :  { %8 = sst [smem:[#allocation4]] %s1197_s1 }
   0x2   :  { %9 = vsyncpa [#allocation6], 0  ;;  %s911_s14 = smov 0   ;;  %s913_s15 = smov 0  }
   0x3   :  { %s915_s16 = smov 0  }
   0x4 LB: > { %s758_s1 = sadd.s32 4294967295, %s880_s16   ;;  %s27_s17 = sadd.s32 1, %s876_s15  ;;  %s880_s16 = sphi %s915_s16, %s15_s16   ;;  %s876_s15 = sphi %s913_s15, %s1213_s15   ;;  %s872_s14 = sphi %s911_s14, %s1212_s14  }
   0x5   : > { %p29_p0 = scmp.ge.s32.totalorder %s27_s17, 2  ;;  %p760_p1 = scmp.ge.s32.totalorder %s880_s16, 1 }
   0x6   : > { %p128_p2 = scmp.lt.s32.totalorder %s880_s16, 3  ;;  %p936_p4 = scmp.eq.s32.totalorder %s758_s1, 0 }
   0x7   : > { %s1215_s17 = smov (%p29_p0, %s27_s17), 0  ;;  %s141_s22 = sshll.u32 %s1196_s0, 4  ;;  %s142_s22 = int_to_ptr.vmem [resolvable:$true] %s141_s22 }
   0x8   : > { %p932_p3 = pnand %p760_p1, %p128_p2  ;;  %s839_s23 = scalar_lea.vmem %s142_s22, 16 }
   0x9   : > { %p840_p7 = scmp.ne.s32.totalorder %s142_s22, %s839_s23  ;;  %p847_p11 = scmp.lt.s32.totalorder %s142_s22, %s142_s22 }
   0xa   : > { %p794_p5 = pneg %p932_p3  ;;  %p848_p12 = scmp.lt.s32.totalorder %s839_s23, %s839_s23 }
   0xc   : > { %p795_p6 = pnand %p936_p4, %p794_p5  ;;  %p849_p13 = por %p848_p12, %p847_p11 }
   0xe   : > { %p841_p8 = pneg %p795_p6 }
  0x10   : > { %p842_p9 = pnand %p841_p8, %p840_p7 }
  0x12   : > { %p843_p10 = pneg %p842_p9 }
  0x14   : > { %p850_p0 = pnand %p849_p13, %p843_p10 }
  0x16   : > { %853 = shalt.err (!%p850_p0)
}
  0x17   : > { %s882_s24 = smov [#allocation5]   ;;  %169 = sbr.rel (%p932_p3) target bundleno = 365 (0x16d), region = 32 }
  0x18   : > { %797 = dma.vmem_to_smem (!%p795_p6), %s142_s22, 16, %s882_s24, [#allocation6]  }
  0x1e   : > { %867 = dma.done.wait (%p936_p4), [#allocation6], 16  }
  0x1f   : > { %869 = vsyncadd (%p936_p4), [#allocation6], 4294967280 }
  0x20   : > { %175 = sfence }
  0x21   : > { %p197_p1 = scmp.lt.s32.totalorder %s872_s14, 1  ;;  %vm214_vm0 = vcmask 1043456   ;;  %v883_v12 = vmov 1966171168   ;;  %v253_v14 = vlaneseq  ;;  %s771_s29 = sld [smem:[#allocation5 + $0x4]] }
  0x22   : > { %v251_v13 = vunpack.c.l.s4 %v883_v12  ;;  %s768_s30 = sld [smem:[#allocation5 + $0x1]]  ;;  %s774_s4 = sld [smem:[#allocation5 + $0x7]] }
  0x23   : > { %s1217_s14 = smov (!%p197_p1, %s872_s14), 1  ;;  %v254_v24 = vshrl.u32 %v253_v14, 7  ;;  %vm967_vm1 = vcmp.lt.s32.totalorder %v253_v14, 256  ;;  %s780_s5 = sld [smem:[#allocation5 + $0xd]] }
  0x24   : > { %s789_s25 = sshll.u32 %s1217_s14, 3  ;;  %v252_v23 = vunpack.c.0.s8 %v251_v13  ;;  %s777_s6 = sld [smem:[#allocation5 + $0xa]] }
  0x25   : > { %s205_s28 = scalar_lea.vmem %s1198_s2, %s789_s25  ;;  %v977_v43 = vsub.s32 0, %v254_v24  ;;  %v979_v44 = vsub.s32 1, %v254_v24  ;;  %s783_s7 = sld [smem:[#allocation5 + $0x10]] }
  0x26   : > { %v210_v0 = vld [vmem:[%s205_s28] sm:$0xff]  ;;  %v962_v34 = vsub.s32 %v252_v23, %v254_v24  ;;  %s884_s8 = smov 127   ;;  %s885_s9 = smov 1  }
  0x27   : > { %v212_v1 = vcombine.high %v210_v0, %v210_v0  ;;  %v215_v2 = vsel %vm214_vm0, %v210_v0, 0.0  ;;  %v229_v3 = vsel %vm214_vm0, %v210_v0, -inf  ;;  %v454_v45 = vstv %s771_s29  ;;  %s1027_s10 = sld [smem:[#allocation5 + $0x2]]  ;;  %s1029_s11 = sld [smem:[#allocation5]] }
  0x28   : > { %v216_v4 = vrot.slane %v215_v2, 4  ;;  %v230_v5 = vrot.slane %v229_v3, 4  ;;  %v417_v46 = vstv %s768_s30  ;;  %v482_v47 = vstv %s774_s4  ;;  %s1031_s12 = sld [smem:[#allocation5 + $0x5]]  ;;  %s1033_s13 = sld [smem:[#allocation5 + $0x3]] }
  0x29   : > { %v222_v6 = vsel %vm214_vm0, %v212_v1, 0.0  ;;  %v236_v7 = vsel %vm214_vm0, %v212_v1, -inf  ;;  %v582_v52 = vstv %s780_s5  ;;  %s1037_s1 = sld [smem:[#allocation5 + $0x8]]  ;;  %s1039_s18 = sld [smem:[#allocation5 + $0x6]] }
  0x2a   : > { %v217_v8 = vadd.f32 %v216_v4, %v215_v2  ;;  %v223_v9 = vrot.slane %v222_v6, 4  ;;  %v231_v10 = vmax.f32 %v229_v3, %v230_v5  ;;  %v237_v11 = vrot.slane %v236_v7, 4  ;;  %s1041_s19 = sld [smem:[#allocation5 + $0x9]]  ;;  %s1043_s20 = sld [smem:[#allocation5 + $0xc]] }
  0x2b   : > { %v546_v3 = vstv %s777_s6  ;;  %v610_v4 = vstv %s783_s7  ;;  %s1045_s21 = sld [smem:[#allocation5 + $0xf]]  ;;  %s1047_s22 = sld [smem:[#allocation5 + $0xe]] }
  0x2c   : > { %v218_v15 = vrot.slane %v217_v8, 2  ;;  %v224_v16 = vadd.f32 %v223_v9, %v222_v6  ;;  %v232_v17 = vrot.slane %v231_v10, 2  ;;  %v238_v18 = vmax.f32 %v236_v7, %v237_v11  ;;  %s1089_s23 = sld [smem:[#allocation5 + $0xb]]  ;;  %s1099_s24 = sld [smem:[#allocation5 + $0x11]] }
  0x2d   : > { %v1022_v11 = vand.u32 127, %v253_v14  ;;  %v414_v23 = vstv %s1029_s11  ;;  %s886_s25 = smov 16   ;;  %s887_s26 = smov 112  }
  0x2e   : > { %v219_v19 = vadd.f32 %v218_v15, %v217_v8  ;;  %v225_v20 = vrot.slane %v224_v16, 2  ;;  %v233_v21 = vmax.f32 %v231_v10, %v232_v17  ;;  %v239_v22 = vrot.slane %v238_v18, 2  ;;  %s379_s27 = sld [smem:[#allocation4]]  ;;  %s767_s28 = sshll.u32 %s1217_s14, 1 }
  0x2f   : > { %v1025_v12 = vadd.s32 128, %v1022_v11  ;;  %v351_v13 = vand.u32 15, %v1022_v11  ;;  %vm406_vm2 = vcmp.lt.s32.totalorder %v1022_v11, 127  ;;  %vm397_vm3 = vcmp.lt.s32.totalorder %v1022_v11, 1  ;;  %s209_s4 = scalar_lea.vmem %s1199_s3, %s767_s28 }
  0x30   : > { %v220_v25 = vrot.slane %v219_v19, 1  ;;  %v226_v26 = vadd.f32 %v225_v20, %v224_v16  ;;  %v234_v27 = vrot.slane %v233_v21, 1  ;;  %v240_v28 = vmax.f32 %v238_v18, %v239_v22 }
  0x31   : > { %v358_v15 = vand.u32 15, %v1025_v12  ;;  %vm1051_vm4 = vcmp.gt.s32.totalorder %v351_v13, 0  ;;  %vm1059_vm6 = vcmp.lt.s32.totalorder %v351_v13, 15  ;;  %vm441_vm8 = vcmp.lt.s32.totalorder %v1022_v11, 16 }
  0x32   : > { %v221_v29 = vadd.f32 %v220_v25, %v219_v19  ;;  %v227_v30 = vrot.slane %v226_v26, 1  ;;  %v235_v31 = vmax.f32 %v233_v21, %v234_v27  ;;  %v241_v32 = vrot.slane %v240_v28, 1 }
  0x33   : > { %vm1055_vm5 = vcmp.gt.s32.totalorder %v358_v15, 0  ;;  %vm1063_vm7 = vcmp.lt.s32.totalorder %v358_v15, 15  ;;  %v432_v21 = vstv %s1027_s10  ;;  %vm375_vm9 = vcmp.ge.s32.totalorder %v1022_v11, 16 }
  0x34   : > { %v228_v33 = vadd.f32 %v227_v30, %v226_v26  ;;  %v242_v35 = vmax.f32 %v240_v28, %v241_v32  ;;  %v451_v30 = vstv %s1033_s13  ;;  %vm506_vm10 = vcmp.lt.s32.totalorder %v1022_v11, 112 }
  0x35   : > { %vm378_vm11 = vcmp.lt.s32.totalorder %v1025_v12, 240 }
  0x36   : > { %v249_v36 = vcombine.low %v221_v29, %v228_v33  ;;  %v272_v37 = vcombine.low %v235_v31, %v242_v35  ;;  %v469_v29 = vstv %s1031_s12  ;;  %v497_v33 = vstv %s1037_s1 }
  0x38   : > { %v256_v38 = vrot.slane %v249_v36, %v962_v34  ;;  %v279_v39 = vrot.slane %v272_v37, %v962_v34  ;;  %v479_v37 = vstv %s1039_s18 }
  0x3a   : > { %v263_v41 = vrot.slane %v256_v38, %v962_v34  ;;  %v286_v42 = vrot.slane %v279_v39, %v962_v34 }
  0x3c   : > { %269 = vst.msk [vmem:[#allocation2] sm:$0x3] %vm967_vm1, %v263_v41  ;;  %288 = vst.msk [vmem:[#allocation3] sm:$0x3] %vm967_vm1, %v286_v42  ;;  %v543_v42 = vstv %s1041_s19 }
  0x43   : > { %v342_v48 = vld [vmem:[#allocation2] sm:$0x3]  ;;  %v343_v50 = vld [vmem:[#allocation3] sm:$0x3] }
  0x44   : > { %v386_v49 = vrot.slane %v342_v48, %v977_v43  ;;  %v982_v51 = vmul.f32 %v454_v45, %v342_v48  ;;  %v984_v53 = vmul.f32 %v417_v46, %v342_v48  ;;  %v986_v54 = vmul.f32 %v482_v47, %v342_v48 }
  0x45   : > { %v390_v55 = vrot.slane %v342_v48, %v979_v44  ;;  %v989_v56 = vmul.f32 %v582_v52, %v343_v50  ;;  %v521_v1 = vrot.slane %v343_v50, %v979_v44  ;;  %v517_v2 = vrot.slane %v343_v50, %v977_v43 }
  0x46   : > { %402 = vrot.lane.b32.xlu1 %v386_v49, %s884_s8  ;;  %393 = vrot.lane.b32.xlu0 %v386_v49, %s885_s9  ;;  %v460_v57 = vrot.slane %v982_v51, %v977_v43  ;;  %v464_v58 = vrot.slane %v982_v51, %v979_v44  ;;  %v423_v59 = vrot.slane %v984_v53, %v977_v43  ;;  %v579_v45 = vstv %s1043_s20 }
  0x47   : > { %v588_v60 = vrot.slane %v989_v56, %v977_v43  ;;  %v592_v61 = vrot.slane %v989_v56, %v979_v44  ;;  %v427_v62 = vrot.slane %v984_v53, %v979_v44  ;;  %v488_v63 = vrot.slane %v986_v54, %v977_v43 }
  0x48   : > { %v492_v0 = vrot.slane %v986_v54, %v979_v44  ;;  %v1009_v5 = vmul.f32 %v546_v3, %v343_v50  ;;  %v1011_v6 = vmul.f32 %v610_v4, %v343_v50  ;;  %v607_v49 = vstv %s1045_s21 }
  0x49   : > { %v597_v50 = vstv %s1047_s22 }
  0x4a   : > { %404 = vrot.lane.b32.xlu1 %v390_v55, %s884_s8  ;;  %395 = vrot.lane.b32.xlu0 %v390_v55, %s885_s9  ;;  %v556_v7 = vrot.slane %v1009_v5, %v979_v44  ;;  %v552_v8 = vrot.slane %v1009_v5, %v977_v43  ;;  %v620_v9 = vrot.slane %v1011_v6, %v979_v44 }
  0x4b   : > { %v616_v10 = vrot.slane %v1011_v6, %v977_v43 }
  0x4e   : > { %526 = vrot.lane.b32.xlu1 %v521_v1, %s885_s9  ;;  %524 = vrot.lane.b32.xlu0 %v517_v2, %s885_s9 }
  0x52   : > { %534 = vrot.lane.b32.xlu1 %v521_v1, %s884_s8  ;;  %532 = vrot.lane.b32.xlu0 %v517_v2, %s884_s8 }
  0xb8   : > { %v403_v14 = vpop.permute.xlu1 %402  ;;  %v394_v16 = vpop.permute.xlu0 %393 }
  0xbc   : > { %v405_v22 = vpop.permute.xlu1 %404  ;;  %v396_v24 = vpop.permute.xlu0 %395 }
  0xbd   : > { %v407_v25 = vsel %vm406_vm2, %v403_v14, %v405_v22  ;;  %v408_v26 = vsel %vm406_vm2, %v405_v22, %v403_v14  ;;  %v398_v27 = vsel %vm397_vm3, %v394_v16, %v396_v24  ;;  %v399_v28 = vsel %vm397_vm3, %v396_v24, %v394_v16 }
  0xbe   : > { %v400_v31 = vsel %vm1051_vm4, %v399_v28, 0.0  ;;  %v401_v32 = vsel %vm1055_vm5, %v398_v27, 0.0  ;;  %v409_v35 = vsel %vm1059_vm6, %v407_v25, 0.0  ;;  %v410_v36 = vsel %vm1063_vm7, %v408_v26, 0.0 }
  0xbf   : > { %v415_v38 = vmul.f32 %v414_v23, %v400_v31  ;;  %v416_v39 = vmul.f32 %v414_v23, %v401_v32  ;;  %v452_v47 = vmul.f32 %v451_v30, %v400_v31  ;;  %v453_v48 = vmul.f32 %v451_v30, %v401_v32 }
  0xc0   : > { %v527_v41 = vpop.permute.xlu1 %526  ;;  %v525_v46 = vpop.permute.xlu0 %524  ;;  %v433_v52 = vmul.f32 %v432_v21, %v409_v35  ;;  %v434_v55 = vmul.f32 %v432_v21, %v410_v36  ;;  %v470_v25 = vmul.f32 %v469_v29, %v409_v35  ;;  %v471_v26 = vmul.f32 %v469_v29, %v410_v36 }
  0xc1   : > { %v528_v1 = vsel %vm397_vm3, %v525_v46, %v527_v41  ;;  %v529_v2 = vsel %vm397_vm3, %v527_v41, %v525_v46  ;;  %v467_v3 = vadd.f32 %v460_v57, %v452_v47  ;;  %v468_v4 = vadd.f32 %v464_v58, %v453_v48 }
  0xc2   : > { %v530_v13 = vsel %vm1051_vm4, %v529_v2, 0.0  ;;  %v531_v15 = vsel %vm1055_vm5, %v528_v1, 0.0  ;;  %v430_v23 = vadd.f32 %v423_v59, %v415_v38  ;;  %v431_v51 = vadd.f32 %v427_v62, %v416_v39 }
  0xc3   : > { %v580_v14 = vmul.f32 %v579_v45, %v530_v13  ;;  %v581_v16 = vmul.f32 %v579_v45, %v531_v15  ;;  %v480_v57 = vmul.f32 %v479_v37, %v400_v31  ;;  %v481_v58 = vmul.f32 %v479_v37, %v401_v32 }
  0xc4   : > { %v535_v21 = vpop.permute.xlu1 %534  ;;  %v533_v22 = vpop.permute.xlu0 %532  ;;  %v545_v27 = vmul.f32 %v543_v42, %v531_v15  ;;  %v561_v28 = vstv %s1089_s23  ;;  %v498_v30 = vmul.f32 %v497_v33, %v409_v35  ;;  %v544_v31 = vmul.f32 %v543_v42, %v530_v13 }
  0xc5   : > { %v536_v17 = vsel %vm406_vm2, %v533_v22, %v535_v21  ;;  %v537_v18 = vsel %vm406_vm2, %v535_v21, %v533_v22  ;;  %v595_v24 = vadd.f32 %v588_v60, %v580_v14  ;;  %v596_v59 = vadd.f32 %v592_v61, %v581_v16 }
  0xc6   : > { %v538_v53 = vsel %vm1059_vm6, %v536_v17, 0.0  ;;  %v539_v62 = vsel %vm1063_vm7, %v537_v18, 0.0  ;;  %v435_v32 = vadd.f32 %v433_v52, %v430_v23  ;;  %v436_v37 = vadd.f32 %v434_v55, %v431_v51 }
  0xc7   : > { %v598_v60 = vmul.f32 %v597_v50, %v538_v53  ;;  %v599_v38 = vmul.f32 %v597_v50, %v539_v62  ;;  %v495_v56 = vadd.f32 %v488_v63, %v480_v57  ;;  %v496_v61 = vadd.f32 %v492_v0, %v481_v58 }
  0xc8   : > { %v499_v19 = vmul.f32 %v497_v33, %v410_v36  ;;  %v608_v20 = vmul.f32 %v607_v49, %v530_v13  ;;  %v625_v39 = vstv %s1099_s24  ;;  %437 = vrot.lane.b32.xlu0 %v435_v32, %s886_s25  ;;  %439 = vrot.lane.b32.xlu1 %v436_v37, %s886_s25  ;;  %v473_v29 = vadd.f32 %v471_v26, %v468_v4 }
  0xc9   : > { %v609_v35 = vmul.f32 %v607_v49, %v531_v15  ;;  %v562_v41 = vmul.f32 %v561_v28, %v538_v53  ;;  %v563_v42 = vmul.f32 %v561_v28, %v539_v62  ;;  %v560_v45 = vadd.f32 %v556_v7, %v545_v27 }
  0xca   : > { %v500_v46 = vadd.f32 %v498_v30, %v495_v56  ;;  %v501_v63 = vadd.f32 %v499_v19, %v496_v61  ;;  %v559_v54 = vadd.f32 %v552_v8, %v544_v31  ;;  %v472_v0 = vadd.f32 %v470_v25, %v467_v3 }
  0xcb   : > { %v601_v33 = vadd.f32 %v599_v38, %v596_v59  ;;  %v600_v36 = vadd.f32 %v598_v60, %v595_v24  ;;  %v626_v47 = vmul.f32 %v625_v39, %v538_v53  ;;  %v627_v48 = vmul.f32 %v625_v39, %v539_v62 }
  0xcc   : > { %502 = vrot.lane.b32.xlu0 %v500_v46, %s887_s26  ;;  %504 = vrot.lane.b32.xlu1 %v501_v63, %s887_s26  ;;  %v565_v49 = vadd.f32 %v563_v42, %v560_v45  ;;  %v564_v50 = vadd.f32 %v562_v41, %v559_v54  ;;  %v624_v7 = vadd.f32 %v620_v9, %v609_v35  ;;  %v380_v55 = vstv %s379_s27 }
  0xcd   : > { %v623_v52 = vadd.f32 %v616_v10, %v608_v20 }
  0xce   : > { %v629_v5 = vadd.f32 %v627_v48, %v624_v7 }
  0xcf   : > { %v628_v8 = vadd.f32 %v626_v47, %v623_v52 }
  0xd0   : > { %568 = vrot.lane.b32.xlu1 %v565_v49, %s886_s25  ;;  %566 = vrot.lane.b32.xlu0 %v564_v50, %s886_s25 }
  0xd4   : > { %632 = vrot.lane.b32.xlu1 %v629_v5, %s887_s26  ;;  %630 = vrot.lane.b32.xlu0 %v628_v8, %s887_s26 }
 0x13a   : > { %v440_v1 = vpop.permute.xlu1 %439  ;;  %v438_v2 = vpop.permute.xlu0 %437 }
 0x13b   : > { %v442_v44 = vsel %vm441_vm8, %v438_v2, %v440_v1  ;;  %v443_v43 = vsel %vm441_vm8, %v440_v1, %v438_v2 }
 0x13c   : > { %v444_v6 = vsel %vm375_vm9, %v443_v43, 0.0  ;;  %v447_v9 = vadd.f32 %v442_v44, %v380_v55 }
 0x13d   : > { %v446_v10 = vadd.f32 %v444_v6, %v380_v55 }
 0x13e   : > { %v475_v3 = vadd.f32 %v473_v29, %v447_v9  ;;  %v505_v4 = vpop.permute.xlu1 %504  ;;  %v503_v13 = vpop.permute.xlu0 %502 }
 0x13f   : > { %v474_v15 = vadd.f32 %v472_v0, %v446_v10  ;;  %v508_v14 = vsel %vm506_vm10, %v505_v4, %v503_v13  ;;  %v507_v16 = vsel %vm506_vm10, %v503_v13, %v505_v4 }
 0x140   : > { %v510_v21 = vsel %vm378_vm11, %v508_v14, 0.0 }
 0x141   : > { %v512_v22 = vadd.f32 %v510_v21, %v475_v3  ;;  %v511_v57 = vadd.f32 %v507_v16, %v474_v15 }
 0x142   : > { %v569_v23 = vpop.permute.xlu1 %568  ;;  %v567_v51 = vpop.permute.xlu0 %566 }
 0x143   : > { %v570_v58 = vsel %vm441_vm8, %v567_v51, %v569_v23  ;;  %v571_v17 = vsel %vm441_vm8, %v569_v23, %v567_v51 }
 0x144   : > { %v572_v18 = vsel %vm375_vm9, %v571_v17, 0.0  ;;  %v575_v24 = vadd.f32 %v570_v58, %v512_v22 }
 0x145   : > { %v574_v59 = vadd.f32 %v572_v18, %v511_v57 }
 0x146   : > { %v603_v53 = vadd.f32 %v601_v33, %v575_v24  ;;  %v633_v62 = vpop.permute.xlu1 %632  ;;  %v631_v25 = vpop.permute.xlu0 %630 }
 0x147   : > { %v602_v26 = vadd.f32 %v600_v36, %v574_v59  ;;  %v634_v27 = vsel %vm506_vm10, %v631_v25, %v633_v62  ;;  %v635_v28 = vsel %vm506_vm10, %v633_v62, %v631_v25 }
 0x148   : > { %v637_v30 = vsel %vm378_vm11, %v635_v28, 0.0 }
 0x149   : > { %v638_v31 = vadd.f32 %v634_v27, %v602_v26  ;;  %v639_v32 = vadd.f32 %v637_v30, %v603_v53 }
 0x14b   : > { %v785_v37 = vmul.f32 -1.442695, %v638_v31  ;;  %v786_v60 = vmul.f32 -1.442695, %v639_v32 }
 0x14d   : > { %831 = vpow2.f32 %v785_v37 }
 0x14e   : > { %833 = vpow2.f32 %v786_v60 }
 0x157   : > { %v832_v38 = vpop.eup %831 }
 0x158   : > { %v834_v56 = vpop.eup %833  ;;  %v646_v61 = vadd.f32 1.0, %v832_v38 }
 0x159   : > { %v647_v19 = vadd.f32 1.0, %v834_v56 }
 0x15a   : > { %835 = vrcp.f32 %v646_v61 }
 0x15b   : > { %837 = vrcp.f32 %v647_v19 }
 0x164   : > { %v836_v20 = vpop.eup %835 }
 0x165   : > { %v838_v39 = vpop.eup %837 }
 0x166   : > { %v654_v11 = vcombine.low %v836_v20, %v838_v39 }
 0x168   : > { %v661_v12 = vrot.slane %v654_v11, %v962_v34 }
 0x16a   : > { %v668_v29 = vrot.slane %v661_v12, %v962_v34 }
 0x16c   : > { %674 = vst.msk [vmem:[%s209_s4] sm:$0x3] %vm967_vm1, %v668_v29 }
 0x16d PF: > { %s15_s16 = sadd.s32 1, %s880_s16   ;;  %s1212_s14 = smov %s876_s15 }
 0x16e   : > { %p12_p2 = scmp.ge.s32.totalorder %s15_s16, 4   ;;  %s1213_s15 = smov %s1215_s17 }
 0x170   :  { %14 = sbr.rel (!%p12_p2) target bundleno = 4 (0x4), region = 79 }
 0x177   :  { %694 = vsyncpa [#allocation6], 1 }
 0x178   :  { %696 = vsyncpa [#allocation6 + $0x1], 1 }

</bundles_post_ra>
